<compile_context>
chip_gen: v6e
topology: v6e:2x2x1
jax: 0.10.0
libtpu: 0.0.40
codegen_flags: <defaults>
</compile_context>

<pallas_src>
import jax
import jax.numpy as jnp
import numpy as np
from jax.experimental import pallas as pl
from jax.experimental.pallas import tpu as pltpu


def _round_up(x, m):
    return ((x + m - 1) // m) * m


def _make_iou_kernel(HW, tk_eff, bc_eff, nk):
    """Build the kernel with all shape/tiling facts baked in statically."""
    n_groups = tk_eff // 128
    rem = HW - (nk - 1) * tk_eff          # valid lanes in the last k block
    last_is_partial = rem < tk_eff

    def kernel(pred_ref, targ_ref, iou_ref, inter_acc, union_acc):
        k = pl.program_id(1)              # spatial / reduction axis (last)

        @pl.when(k == 0)
        def _():
            inter_acc[...] = jnp.zeros_like(inter_acc)
            union_acc[...] = jnp.zeros_like(union_acc)

        def chunk(g, lane_limit):
            """Load one 128-lane group, return (p*t, p+t), optionally masked."""
            lo = g * 128
            p = jax.nn.sigmoid(pred_ref[:, lo:lo + 128].astype(jnp.float32))
            t = targ_ref[:, lo:lo + 128].astype(jnp.float32)
            if lane_limit is not None:    # static partial-group mask
                lane = jax.lax.broadcasted_iota(jnp.int32, (bc_eff, 128), 1)
                valid = lane < lane_limit
                p = jnp.where(valid, p, 0.0)
                t = jnp.where(valid, t, 0.0)
            return p * t, p + t

        def accumulate(num_full, partial_lanes):
            ia = inter_acc[...]
            ua = union_acc[...]
            for g in range(num_full):
                pt, s = chunk(g, None)
                ia = ia + pt
                ua = ua + s
            if partial_lanes:
                pt, s = chunk(num_full, partial_lanes)
                ia = ia + pt
                ua = ua + s
            inter_acc[...] = ia
            union_acc[...] = ua

        if last_is_partial and nk > 1:
            # Hot path (all blocks but the last) stays completely unmasked.
            @pl.when(k < nk - 1)
            def _():
                accumulate(n_groups, 0)

            @pl.when(k == nk - 1)
            def _():
                accumulate(rem // 128, rem % 128)
        elif last_is_partial:             # single, partially-valid block
            accumulate(rem // 128, rem % 128)
        else:                             # HW divisible by tk_eff: no masking
            accumulate(n_groups, 0)

        @pl.when(k == nk - 1)
        def _():
            # Single cross-lane (XLU) reduce per row tile, deferred to the end.
            inter = jnp.sum(inter_acc[...], axis=1, keepdims=True)
            union = jnp.sum(union_acc[...], axis=1, keepdims=True) - inter
            iou_ref[...] = 1.0 - inter / union

    return kernel


def iou_loss(pred, target, *, tk=4096, bc_tile=256):
    """Pallas implementation of IOU.forward(pred, target) -> scalar.

    pred/target are NCHW.  They are streamed in their given dtypes and cast to
    f32 inside the kernel (so a bf16/int8 binary `target` halves/quarters its
    HBM traffic with bit-exact results).
    """
    B, C, H, W = pred.shape
    BC, HW = B * C, H * W

    p2 = pred.reshape(BC, HW)             # contiguous NCHW -> free reshape
    t2 = target.reshape(BC, HW)

    # Tile sizes respecting the (8, 128) layout constraint, shrunk for small inputs.
    tk_eff = min(_round_up(max(tk, 128), 128), _round_up(HW, 128))
    bc_eff = min(_round_up(max(bc_tile, 8), 8), _round_up(BC, 8))

    # Clamp the double-buffered input window to the real chip VMEM capacity
    # (64 MiB on v7x, 128 MiB on v5e/v6e), leaving headroom for accumulators
    # and compiler temporaries.
    try:
        vmem_cap = int(pltpu.get_tpu_info().vmem_capacity_bytes)
    except Exception:  # noqa: BLE001 - be conservative if the query fails
        vmem_cap = 64 << 20
    budget = vmem_cap - (24 << 20)
    itemsize = p2.dtype.itemsize + t2.dtype.itemsize
    while tk_eff > 128 and 2 * bc_eff * tk_eff * itemsize > budget:
        tk_eff = _round_up(max(tk_eff // 2, 128), 128)

    win_bytes = 2 * bc_eff * tk_eff * itemsize
    vmem_limit = int(min(max(win_bytes + (16 << 20), 32 << 20),
                         vmem_cap - (4 << 20)))

    grid = (pl.cdiv(BC, bc_eff), pl.cdiv(HW, tk_eff))
    kernel = _make_iou_kernel(HW, tk_eff, bc_eff, grid[1])

    iou_rows = pl.pallas_call(
        kernel,
        out_shape=jax.ShapeDtypeStruct((BC, 1), jnp.float32),
        grid_spec=pltpu.PrefetchScalarGridSpec(
            num_scalar_prefetch=0,
            grid=grid,                      # (rows, spatial-reduction)
            in_specs=[
                pl.BlockSpec((bc_eff, tk_eff), lambda i, k: (i, k)),
                pl.BlockSpec((bc_eff, tk_eff), lambda i, k: (i, k)),
            ],
            out_specs=pl.BlockSpec((bc_eff, 1), lambda i, k: (i, 0)),
            scratch_shapes=[
                pltpu.VMEM((bc_eff, 128), jnp.float32),   # inter lane-accum
                pltpu.VMEM((bc_eff, 128), jnp.float32),   # (p+t) lane-accum
            ],
        ),
        compiler_params=pltpu.CompilerParams(
            dimension_semantics=("parallel", "arbitrary"),
            vmem_limit_bytes=vmem_limit),
    )(p2, t2)

    return jnp.mean(iou_rows)


def _iou_ref(pred, target):
    """Pure-JAX reference mirroring the PyTorch module."""
    p = jax.nn.sigmoid(pred)
    inter = jnp.sum(p * target, axis=(2, 3))
    union = jnp.sum(p + target, axis=(2, 3)) - inter
    return jnp.mean(1.0 - inter / union)


if __name__ == "__main__":
    key = jax.random.PRNGKey(0)

    # Case 1: nicely shaped input (no ragged edges).
    k1, k2, key = jax.random.split(key, 3)
    B, C, H, W = 2, 4, 16, 16
    pred = jax.random.normal(k1, (B, C, H, W), dtype=jnp.float32)
    target = (jax.random.uniform(k2, (B, C, H, W)) > 0.5).astype(jnp.float32)
    out = jax.block_until_ready(iou_loss(pred, target))
    ref = jax.block_until_ready(_iou_ref(pred, target))
    np.testing.assert_allclose(np.asarray(out), np.asarray(ref),
                               rtol=1e-5, atol=1e-5)

    # Case 2: odd spatial size + BC not a multiple of 8 (ragged HW tail and
    # ragged row tile, all handled in-kernel — no wrapper padding).
    k3, k4, key = jax.random.split(key, 3)
    B2, C2, H2, W2 = 1, 3, 7, 7
    pred2 = jax.random.normal(k3, (B2, C2, H2, W2), dtype=jnp.float32)
    target2 = (jax.random.uniform(k4, (B2, C2, H2, W2)) > 0.5).astype(jnp.float32)
    out2 = jax.block_until_ready(iou_loss(pred2, target2))
    ref2 = jax.block_until_ready(_iou_ref(pred2, target2))
    np.testing.assert_allclose(np.asarray(out2), np.asarray(ref2),
                               rtol=1e-5, atol=1e-5)

    # Case 3: binary target supplied as bf16 (half the HBM bytes for target,
    # bit-exact for {0,1} values).
    out3 = jax.block_until_ready(iou_loss(pred, target.astype(jnp.bfloat16)))
    np.testing.assert_allclose(np.asarray(out3), np.asarray(ref),
                               rtol=1e-5, atol=1e-5)

    print("KERNEL_OK")
</pallas_src>

<mosaic_0001>
module attributes {stable_mosaic.version = 11 : i64} {
  func.func @kernel(%arg0: i32, %arg1: i32, %arg2: memref<8x256xf32, #tpu.memory_space<vmem>>, %arg3: memref<8x256xf32, #tpu.memory_space<vmem>>, %arg4: memref<8x1xf32, #tpu.memory_space<vmem>>, %arg5: memref<8x128xf32, #tpu.memory_space<vmem>>, %arg6: memref<8x128xf32, #tpu.memory_space<vmem>>) attributes {dimension_semantics = [#tpu.dimension_semantics<parallel>, #tpu.dimension_semantics<arbitrary>], iteration_bounds = array<i64: 1, 1>, scalar_prefetch = 0 : i64, scratch_operands = 2 : i64, tpu.core_type = #tpu.core_type<tc>, window_params = [{transform_indices = @transform_0, window_bounds = array<i64: 8, 256>}, {transform_indices = @transform_1, window_bounds = array<i64: 8, 256>}, {transform_indices = @transform_2, window_bounds = array<i64: 8, 1>}]} {
    %c0_i32 = arith.constant 0 : i32
    %0 = arith.cmpi eq, %arg1, %c0_i32 : i32
    %1 = arith.extui %0 : i1 to i32
    %c0_i32_0 = arith.constant 0 : i32
    %2 = arith.cmpi ne, %1, %c0_i32_0 : i32
    scf.if %2 {
      %cst_18 = arith.constant 0.000000e+00 : f32
      %32 = vector.broadcast %cst_18 : f32 to vector<8x128xf32>
      %c0_19 = arith.constant 0 : index
      %c0_20 = arith.constant 0 : index
      %33 = vector.load %arg5[%c0_19, %c0_20] : memref<8x128xf32, #tpu.memory_space<vmem>>, vector<8x128xf32>
      tpu.vector_store %arg5[%c0_19, %c0_20], %32 {strides = array<i32>} : memref<8x128xf32, #tpu.memory_space<vmem>>, vector<8x128xf32>,
      %cst_21 = arith.constant 0.000000e+00 : f32
      %34 = vector.broadcast %cst_21 : f32 to vector<8x128xf32>
      %c0_22 = arith.constant 0 : index
      %c0_23 = arith.constant 0 : index
      %35 = vector.load %arg6[%c0_22, %c0_23] : memref<8x128xf32, #tpu.memory_space<vmem>>, vector<8x128xf32>
      tpu.vector_store %arg6[%c0_22, %c0_23], %34 {strides = array<i32>} : memref<8x128xf32, #tpu.memory_space<vmem>>, vector<8x128xf32>,
    } else {
    }
    %c0 = arith.constant 0 : index
    %c0_1 = arith.constant 0 : index
    %3 = vector.load %arg5[%c0, %c0_1] : memref<8x128xf32, #tpu.memory_space<vmem>>, vector<8x128xf32>
    %c0_2 = arith.constant 0 : index
    %c0_3 = arith.constant 0 : index
    %4 = vector.load %arg6[%c0_2, %c0_3] : memref<8x128xf32, #tpu.memory_space<vmem>>, vector<8x128xf32>
    %c0_4 = arith.constant 0 : index
    %c0_5 = arith.constant 0 : index
    %5 = vector.load %arg2[%c0_4, %c0_5] : memref<8x256xf32, #tpu.memory_space<vmem>>, vector<8x128xf32>
    %6 = arith.negf %5 : vector<8x128xf32>
    %7 = math.exp %6 : vector<8x128xf32>
    %cst = arith.constant 1.000000e+00 : f32
    %8 = vector.broadcast %cst : f32 to vector<8x128xf32>
    %9 = arith.addf %8, %7 : vector<8x128xf32>
    %10 = arith.divf %8, %9 : vector<8x128xf32>
    %c0_6 = arith.constant 0 : index
    %c0_7 = arith.constant 0 : index
    %11 = vector.load %arg3[%c0_6, %c0_7] : memref<8x256xf32, #tpu.memory_space<vmem>>, vector<8x128xf32>
    %12 = arith.mulf %10, %11 : vector<8x128xf32>
    %13 = arith.addf %10, %11 : vector<8x128xf32>
    %14 = arith.addf %3, %12 : vector<8x128xf32>
    %15 = arith.addf %4, %13 : vector<8x128xf32>
    %c0_8 = arith.constant 0 : index
    %c128 = arith.constant 128 : index
    %16 = vector.load %arg2[%c0_8, %c128] : memref<8x256xf32, #tpu.memory_space<vmem>>, vector<8x128xf32>
    %17 = arith.negf %16 : vector<8x128xf32>
    %18 = math.exp %17 : vector<8x128xf32>
    %cst_9 = arith.constant 1.000000e+00 : f32
    %19 = vector.broadcast %cst_9 : f32 to vector<8x128xf32>
    %20 = arith.addf %19, %18 : vector<8x128xf32>
    %21 = arith.divf %19, %20 : vector<8x128xf32>
    %c0_10 = arith.constant 0 : index
    %c128_11 = arith.constant 128 : index
    %22 = vector.load %arg3[%c0_10, %c128_11] : memref<8x256xf32, #tpu.memory_space<vmem>>, vector<8x128xf32>
    %23 = arith.mulf %21, %22 : vector<8x128xf32>
    %24 = arith.addf %21, %22 : vector<8x128xf32>
    %25 = arith.addf %14, %23 : vector<8x128xf32>
    %26 = arith.addf %15, %24 : vector<8x128xf32>
    %c0_12 = arith.constant 0 : index
    %c0_13 = arith.constant 0 : index
    %27 = vector.load %arg5[%c0_12, %c0_13] : memref<8x128xf32, #tpu.memory_space<vmem>>, vector<8x128xf32>
    tpu.vector_store %arg5[%c0_12, %c0_13], %25 {strides = array<i32>} : memref<8x128xf32, #tpu.memory_space<vmem>>, vector<8x128xf32>,
    %c0_14 = arith.constant 0 : index
    %c0_15 = arith.constant 0 : index
    %28 = vector.load %arg6[%c0_14, %c0_15] : memref<8x128xf32, #tpu.memory_space<vmem>>, vector<8x128xf32>
    tpu.vector_store %arg6[%c0_14, %c0_15], %26 {strides = array<i32>} : memref<8x128xf32, #tpu.memory_space<vmem>>, vector<8x128xf32>,
    %c0_i32_16 = arith.constant 0 : i32
    %29 = arith.cmpi eq, %arg1, %c0_i32_16 : i32
    %30 = arith.extui %29 : i1 to i32
    %c0_i32_17 = arith.constant 0 : i32
    %31 = arith.cmpi ne, %30, %c0_i32_17 : i32
    scf.if %31 {
      %c0_18 = arith.constant 0 : index
      %c0_19 = arith.constant 0 : index
      %32 = vector.load %arg5[%c0_18, %c0_19] : memref<8x128xf32, #tpu.memory_space<vmem>>, vector<8x128xf32>
      %cst_20 = arith.constant dense<0.000000e+00> : vector<8xf32>
      %33 = vector.multi_reduction <add>, %32, %cst_20 [1] : vector<8x128xf32> to vector<8xf32>
      %34 = vector.shape_cast %33 : vector<8xf32> to vector<8x1xf32>
      %c0_21 = arith.constant 0 : index
      %c0_22 = arith.constant 0 : index
      %35 = vector.load %arg6[%c0_21, %c0_22] : memref<8x128xf32, #tpu.memory_space<vmem>>, vector<8x128xf32>
      %cst_23 = arith.constant dense<0.000000e+00> : vector<8xf32>
      %36 = vector.multi_reduction <add>, %35, %cst_23 [1] : vector<8x128xf32> to vector<8xf32>
      %37 = vector.shape_cast %36 : vector<8xf32> to vector<8x1xf32>
      %38 = arith.subf %37, %34 : vector<8x1xf32>
      %39 = arith.divf %34, %38 : vector<8x1xf32>
      %cst_24 = arith.constant 1.000000e+00 : f32
      %40 = vector.broadcast %cst_24 : f32 to vector<8x1xf32>
      %41 = arith.subf %40, %39 : vector<8x1xf32>
      %c0_25 = arith.constant 0 : index
      %c0_26 = arith.constant 0 : index
      %42 = vector.load %arg4[%c0_25, %c0_26] : memref<8x1xf32, #tpu.memory_space<vmem>>, vector<8x1xf32>
      tpu.vector_store %arg4[%c0_25, %c0_26], %41 {strides = array<i32>} : memref<8x1xf32, #tpu.memory_space<vmem>>, vector<8x1xf32>,
    } else {
    }
    return
  }
  func.func @transform_0(%arg0: i32, %arg1: i32) -> (i32, i32) {
    %c0_i32 = arith.constant 0 : i32
    return %arg0, %arg1 : i32, i32
  }
  func.func @transform_1(%arg0: i32, %arg1: i32) -> (i32, i32) {
    %c0_i32 = arith.constant 0 : i32
    return %arg0, %arg1 : i32, i32
  }
  func.func @transform_2(%arg0: i32, %arg1: i32) -> (i32, i32) {
    %c0_i32 = arith.constant 0 : i32
    %c0_i32_0 = arith.constant 0 : i32
    return %arg0, %c0_i32 : i32, i32
  }
}

</mosaic_0001>

<bundles_post_ra>
// kernel: tpu_custom_call.1
= control target key start
LH: loop header
LB: loop body
LE: loop exit
PB: predicated region body
PF: predicated region fallthrough
CT: control target
= control target key end

     0   :  { %7 = vsyncpa [#allocation5], 0  ;;  %s174_s0 = inlined_call_operand.hbm [shape: f32[8,256], index: 0, kind: input, shape index: {}]   ;;  %s175_s1 = inlined_call_operand.hbm [shape: f32[8,256], index: 1, kind: input, shape index: {}]   ;;  %s176_s2 = inlined_call_operand.vmem [shape: f32[8,1], index: 2, kind: output, shape index: {}]  }
   0x1   :  { %8 = vsyncpa [#allocation7], 0  ;;  %s148_s9 = smov [#allocation4]   ;;  %s149_s11 = smov [#allocation6]  }
   0x2   :  { %s15_s10 = sshll.u32 %s148_s9, 4  ;;  %s25_s12 = sshll.u32 %s149_s11, 4  ;;  %s16_s10 = int_to_ptr.vmem [resolvable:$true] %s15_s10  ;;  %s26_s12 = int_to_ptr.vmem [resolvable:$true] %s25_s12 }
   0x3   :  { %s112_s13 = scalar_lea.vmem %s16_s10, 256  ;;  %p117_p1 = scmp.lt.s32.totalorder %s16_s10, %s16_s10 }
   0x4   :  { %p113_p0 = scmp.ne.s32.totalorder %s16_s10, %s112_s13  ;;  %p118_p2 = scmp.lt.s32.totalorder %s112_s13, %s112_s13 }
   0x6   :  { %p119_p3 = por %p118_p2, %p117_p1 }
   0x8   :  { %p120_p4 = pnand %p119_p3, %p113_p0 }
   0xa   :  { %123 = shalt.err (!%p120_p4)
}
   0xb   :  { %18 = dma.hbm_to_vmem [thread:$0]  %s174_s0, 256, %s16_s10, [#allocation5]  }
   0xc   :  { %s132_s16 = scalar_lea.vmem %s26_s12, 256  ;;  %p137_p6 = scmp.lt.s32.totalorder %s26_s12, %s26_s12 }
   0xd   :  { %p133_p5 = scmp.ne.s32.totalorder %s26_s12, %s132_s16  ;;  %p138_p7 = scmp.lt.s32.totalorder %s132_s16, %s132_s16 }
   0xf   :  { %p139_p8 = por %p138_p7, %p137_p6 }
  0x11   :  { %p140_p9 = pnand %p139_p8, %p133_p5 }
  0x13   :  { %143 = shalt.err (!%p140_p9)
}
  0x14   :  { %28 = dma.hbm_to_vmem [thread:$0]  %s175_s1, 256, %s26_s12, [#allocation7]  }
  0x15   :  { %144 = dma.done.wait [#allocation5], 256  }
  0x16   :  { %145 = vsyncadd [#allocation5], 4294967040 }
  0x17   :  { %146 = dma.done.wait [#allocation7], 256  }
  0x18   :  { %147 = vsyncadd [#allocation7], 4294967040  ;;  %v43_v0 = vld [vmem:[#allocation4] sm:$0xff]  ;;  %v55_v1 = vld [vmem:[#allocation4 + $0x8] sm:$0xff]  ;;  %vm82_vm0 = vcmask 7168  }
  0x19   :  { %v90_v2 = vmul.f32 -1.442695, %v43_v0  ;;  %v91_v3 = vmul.f32 -1.442695, %v55_v1  ;;  %v50_v8 = vld [vmem:[#allocation6] sm:$0xff]  ;;  %v62_v9 = vld [vmem:[#allocation6 + $0x8] sm:$0xff] }
  0x1b   :  { %94 = vpow2.f32 %v90_v2 }
  0x1c   :  { %96 = vpow2.f32 %v91_v3 }
  0x28   :  { %v95_v4 = vpop.eup %94 }
  0x29   :  { %v97_v5 = vpop.eup %96  ;;  %v47_v6 = vadd.f32 1.0, %v95_v4 }
  0x2a   :  { %v59_v7 = vadd.f32 1.0, %v97_v5 }
  0x2b   :  { %98 = vrcp.f32 %v47_v6 }
  0x2c   :  { %100 = vrcp.f32 %v59_v7 }
  0x38   :  { %v99_v10 = vpop.eup %98 }
  0x39   :  { %v101_v11 = vpop.eup %100  ;;  %v51_v12 = vmul.f32 %v99_v10, %v50_v8  ;;  %v52_v14 = vadd.f32 %v99_v10, %v50_v8 }
  0x3a   :  { %v63_v13 = vmul.f32 %v101_v11, %v62_v9  ;;  %v64_v15 = vadd.f32 %v101_v11, %v62_v9 }
  0x3c   :  { %v65_v16 = vadd.f32 %v63_v13, %v51_v12  ;;  %v66_v17 = vadd.f32 %v64_v15, %v52_v14 }
  0x3e   :  { %73 = vadd.xlane.f32.xlu0 %v65_v16 }
  0x42   :  { %76 = vadd.xlane.f32.xlu0 %v66_v17 }
  0xc7   :  { %v74_v18 = vpop.xlane.xlu0 %73 }
  0xcb   :  { %v77_v19 = vpop.xlane.xlu0 %76 }
  0xcc   :  { %v78_v20 = vsub.f32 %v77_v19, %v74_v18 }
  0xce   :  { %102 = vrcp.f32 %v78_v20 }
  0xdb   :  { %v103_v21 = vpop.eup %102 }
  0xdc   :  { %v80_v22 = vmul.f32 %v103_v21, %v74_v18 }
  0xde   :  { %v81_v23 = vsub.f32 1.0, %v80_v22 }
  0xe0   :  { %83 = vst.msk [vmem:[%s176_s2] sm:$0xff] %vm82_vm0, %v81_v23 }
  0xe1   :  { %88 = vsyncpa [#allocation5], 1 }
  0xe2   :  { %89 = vsyncpa [#allocation7], 1 }

</bundles_post_ra>
